<compile_context>
chip_gen: v7x
topology: tpu7x:2x2x1
jax: 0.10.0
libtpu: 0.0.40
codegen_flags: <defaults>
</compile_context>

<pallas_src>
import math
from functools import partial

import jax
import jax.numpy as jnp
from jax.experimental import pallas as pl
from jax.experimental.pallas import tpu as pltpu

# ------------------------- small synthetic BERT config -------------------------
VOCAB_SIZE = 100
MAX_POS    = 16
TYPE_VOCAB = 2
HIDDEN     = 32          # (real BERT: 768; kept small per instructions)
NUM_HEADS  = 2
HEAD_DIM   = HIDDEN // NUM_HEADS
FFN        = 64
NUM_LAYERS = 2
LN_EPS     = 1e-12
BATCH      = 2
SEQ        = 8


def _layer_norm(x, g, b):
    # Two independent reductions (E[x], E[x^2]) pipeline through the XLU better
    # than mean-then-centered-mean; 1/H folded into a constant multiply.
    inv_n = 1.0 / x.shape[-1]
    mu  = jnp.sum(x, axis=-1, keepdims=True) * inv_n
    ex2 = jnp.sum(x * x, axis=-1, keepdims=True) * inv_n
    var = ex2 - mu * mu
    return (x - mu) * jax.lax.rsqrt(var + LN_EPS) * g + b


# --------------------------------- kernel body ----------------------------------
def _bert_layer_kernel(emb_ref, bias_ref, emb_g_ref, emb_b_ref,
                       wqkv_ref, bqkv_ref, wo_ref, bo_ref,
                       ln1_g_ref, ln1_b_ref,
                       wff1_ref, bff1_ref, wff2_ref, bff2_ref,
                       ln2_g_ref, ln2_b_ref,
                       out_ref, h_ref, *, seq):
    l = pl.program_id(1)
    scale = 1.0 / math.sqrt(HEAD_DIM)

    # Embedding LayerNorm initializes the persistent hidden-state scratch.
    @pl.when(l == 0)
    def _():
        h_ref[...] = _layer_norm(emb_ref[0], emb_g_ref[...], emb_b_ref[...])

    h = h_ref[...]                       # (S, H) f32
    bias = bias_ref[0]                   # (1, S) additive mask (hoisted)

    # ---- fused Q|K|V projection: one bf16 MXU matmul, f32 accumulation --------
    qkv = jnp.dot(h.astype(jnp.bfloat16), wqkv_ref[0],
                  preferred_element_type=jnp.float32) + bqkv_ref[0]   # (S, 3H)

    # (S, 3H) -> (3*NH, S, dh): one reshape + one transpose, then head-batched
    # attention matmuls (no per-head lane-unaligned slices / concats).
    qkv_h = jnp.transpose(qkv.reshape(seq, 3 * NUM_HEADS, HEAD_DIM), (1, 0, 2))
    qkv_h = qkv_h.astype(jnp.bfloat16)
    q = qkv_h[:NUM_HEADS]                                   # (NH, S, dh)
    k = qkv_h[NUM_HEADS:2 * NUM_HEADS]
    v = qkv_h[2 * NUM_HEADS:]

    s = jnp.einsum('hqd,hkd->hqk', q, k,
                   preferred_element_type=jnp.float32) * scale + bias[None]
    m = jnp.max(s, axis=-1, keepdims=True)
    p = jnp.exp(s - m)
    denom = jnp.sum(p, axis=-1, keepdims=True)
    p = p * pl.reciprocal(denom, approx=True)               # EUP slot

    ctx = jnp.einsum('hqk,hkd->hqd', p.astype(jnp.bfloat16), v,
                     preferred_element_type=jnp.float32)    # (NH, S, dh)
    ctx = jnp.transpose(ctx, (1, 0, 2)).reshape(seq, HIDDEN)

    # ---- output projection + residual + LayerNorm ------------------------------
    attn = jnp.dot(ctx.astype(jnp.bfloat16), wo_ref[0],
                   preferred_element_type=jnp.float32) + bo_ref[0]
    h = _layer_norm(h + attn, ln1_g_ref[0], ln1_b_ref[0])

    # ---- FFN + residual + LayerNorm ---------------------------------------------
    ff = jnp.dot(h.astype(jnp.bfloat16), wff1_ref[0],
                 preferred_element_type=jnp.float32) + bff1_ref[0]
    # TODO(synk): BERT uses the exact erf GELU; tanh approximation used here.
    ff = jax.nn.gelu(ff, approximate=True)
    ff = jnp.dot(ff.astype(jnp.bfloat16), wff2_ref[0],
                 preferred_element_type=jnp.float32) + bff2_ref[0]
    h = _layer_norm(h + ff, ln2_g_ref[0], ln2_b_ref[0])

    h_ref[...] = h

    # CLS token (row 0 of this batch element's sequence), written once at the end.
    @pl.when(l == pl.num_programs(1) - 1)
    def _():
        out_ref[...] = h[:1, :].reshape(1, 1, HIDDEN).astype(out_ref.dtype)


# ----------------------------------- wrapper ------------------------------------
def bert_classifier_forward(params, input_ids, attention_mask):
    """Reproduces BertClassifier.forward: returns last_hidden_state[:, 0, :]."""
    B, S = input_ids.shape
    positions = jnp.arange(S, dtype=jnp.int32)
    token_type = jnp.zeros((B, S), dtype=jnp.int32)

    # Embedding gathers are plain-JAX glue feeding the kernel.
    emb = (params["word_emb"][input_ids]
           + params["pos_emb"][positions][None, :, :]
           + params["type_emb"][token_type])                        # (B, S, H) f32

    # Additive attention bias: 0 where attended, -10000 where masked.
    mask_bias = ((1.0 - attention_mask.astype(jnp.float32))
                 * -10000.0).reshape(B, 1, S)

    def b_map(b, l):      # per-batch-element blocks
        return (b, 0, 0)

    def l_map(b, l):      # per-layer weight blocks (double-buffered by pipeline)
        return (l, 0, 0)

    def fixed2(b, l):
        return (0, 0)

    in_specs = [
        pl.BlockSpec((1, S, HIDDEN), b_map),                 # emb
        pl.BlockSpec((1, 1, S), b_map),                      # mask bias
        pl.BlockSpec((1, HIDDEN), fixed2),                   # emb_ln_g
        pl.BlockSpec((1, HIDDEN), fixed2),                   # emb_ln_b
        pl.BlockSpec((1, HIDDEN, 3 * HIDDEN), l_map),        # wqkv (bf16)
        pl.BlockSpec((1, 1, 3 * HIDDEN), l_map),             # bqkv
        pl.BlockSpec((1, HIDDEN, HIDDEN), l_map),            # wo   (bf16)
        pl.BlockSpec((1, 1, HIDDEN), l_map),                 # bo
        pl.BlockSpec((1, 1, HIDDEN), l_map),                 # ln1_g
        pl.BlockSpec((1, 1, HIDDEN), l_map),                 # ln1_b
        pl.BlockSpec((1, HIDDEN, FFN), l_map),               # wff1 (bf16)
        pl.BlockSpec((1, 1, FFN), l_map),                    # bff1
        pl.BlockSpec((1, FFN, HIDDEN), l_map),               # wff2 (bf16)
        pl.BlockSpec((1, 1, HIDDEN), l_map),                 # bff2
        pl.BlockSpec((1, 1, HIDDEN), l_map),                 # ln2_g
        pl.BlockSpec((1, 1, HIDDEN), l_map),                 # ln2_b
    ]

    out = pl.pallas_call(
        partial(_bert_layer_kernel, seq=S),
        out_shape=jax.ShapeDtypeStruct((B, 1, HIDDEN), jnp.float32),
        grid_spec=pltpu.PrefetchScalarGridSpec(
            num_scalar_prefetch=0,
            grid=(B, NUM_LAYERS),
            in_specs=in_specs,
            out_specs=pl.BlockSpec((1, 1, HIDDEN), b_map),
            scratch_shapes=[pltpu.VMEM((S, HIDDEN), jnp.float32)],  # persistent h
        ),
        compiler_params=pltpu.CompilerParams(
            dimension_semantics=("parallel", "arbitrary"),
            vmem_limit_bytes=32 * 1024 * 1024),
    )(emb, mask_bias,
      params["emb_ln_g"], params["emb_ln_b"],
      params["wqkv"], params["bqkv"], params["wo"], params["bo"],
      params["ln1_g"], params["ln1_b"],
      params["w_ff1"], params["b_ff1"], params["w_ff2"], params["b_ff2"],
      params["ln2_g"], params["ln2_b"])

    return out.reshape(B, HIDDEN)


# ----------------------------- parameter creation ------------------------------
def init_params(key):
    def nrm(k, shape, dtype=jnp.float32):
        return (0.02 * jax.random.normal(k, shape, dtype=jnp.float32)).astype(dtype)

    keys = jax.random.split(key, 4 + NUM_LAYERS)
    wqkv, wo, wff1, wff2 = [], [], [], []
    for l in range(NUM_LAYERS):
        lk = jax.random.split(keys[4 + l], 6)
        wq = nrm(lk[0], (HIDDEN, HIDDEN))
        wk = nrm(lk[1], (HIDDEN, HIDDEN))
        wv = nrm(lk[2], (HIDDEN, HIDDEN))
        # fused QKV: columns = [Q heads | K heads | V heads]
        wqkv.append(jnp.concatenate([wq, wk, wv], axis=1).astype(jnp.bfloat16))
        wo.append(nrm(lk[3], (HIDDEN, HIDDEN), jnp.bfloat16))
        wff1.append(nrm(lk[4], (HIDDEN, FFN), jnp.bfloat16))
        wff2.append(nrm(lk[5], (FFN, HIDDEN), jnp.bfloat16))

    L = NUM_LAYERS
    return {
        "word_emb": nrm(keys[0], (VOCAB_SIZE, HIDDEN)),
        "pos_emb":  nrm(keys[1], (MAX_POS, HIDDEN)),
        "type_emb": nrm(keys[2], (TYPE_VOCAB, HIDDEN)),
        "emb_ln_g": jnp.ones((1, HIDDEN), jnp.float32),
        "emb_ln_b": jnp.zeros((1, HIDDEN), jnp.float32),
        "wqkv": jnp.stack(wqkv),                       # (L, H, 3H) bf16
        "bqkv": jnp.zeros((L, 1, 3 * HIDDEN), jnp.float32),
        "wo":   jnp.stack(wo),                         # (L, H, H)  bf16
        "bo":   jnp.zeros((L, 1, HIDDEN), jnp.float32),
        "ln1_g": jnp.ones((L, 1, HIDDEN), jnp.float32),
        "ln1_b": jnp.zeros((L, 1, HIDDEN), jnp.float32),
        "w_ff1": jnp.stack(wff1),                      # (L, H, F)  bf16
        "b_ff1": jnp.zeros((L, 1, FFN), jnp.float32),
        "w_ff2": jnp.stack(wff2),                      # (L, F, H)  bf16
        "b_ff2": jnp.zeros((L, 1, HIDDEN), jnp.float32),
        "ln2_g": jnp.ones((L, 1, HIDDEN), jnp.float32),
        "ln2_b": jnp.zeros((L, 1, HIDDEN), jnp.float32),
    }


# ------------------------------------ main --------------------------------------
if __name__ == "__main__":
    root = jax.random.PRNGKey(0)
    k_param, k_ids = jax.random.split(root)

    params = init_params(k_param)

    input_ids = jax.random.randint(k_ids, (BATCH, SEQ), 0, VOCAB_SIZE,
                                   dtype=jnp.int32)
    # second example has 2 padding tokens at the end
    attention_mask = jnp.array(
        [[1] * SEQ,
         [1] * (SEQ - 2) + [0] * 2], dtype=jnp.int32)

    fwd = jax.jit(bert_classifier_forward)
    out = fwd(params, input_ids, attention_mask)
    out = jax.block_until_ready(out)
    assert out.shape == (BATCH, HIDDEN)
    assert bool(jnp.all(jnp.isfinite(out)))
    print("KERNEL_OK")
</pallas_src>

<mosaic_0001>
module attributes {stable_mosaic.version = 11 : i64} {
  func.func @_bert_layer_kernel(%arg0: i32, %arg1: i32, %arg2: memref<1x8x32xf32, #tpu.memory_space<vmem>>, %arg3: memref<1x1x8xf32, #tpu.memory_space<vmem>>, %arg4: memref<1x32xf32, #tpu.memory_space<vmem>>, %arg5: memref<1x32xf32, #tpu.memory_space<vmem>>, %arg6: memref<1x32x96xbf16, #tpu.memory_space<vmem>>, %arg7: memref<1x1x96xf32, #tpu.memory_space<vmem>>, %arg8: memref<1x32x32xbf16, #tpu.memory_space<vmem>>, %arg9: memref<1x1x32xf32, #tpu.memory_space<vmem>>, %arg10: memref<1x1x32xf32, #tpu.memory_space<vmem>>, %arg11: memref<1x1x32xf32, #tpu.memory_space<vmem>>, %arg12: memref<1x32x64xbf16, #tpu.memory_space<vmem>>, %arg13: memref<1x1x64xf32, #tpu.memory_space<vmem>>, %arg14: memref<1x64x32xbf16, #tpu.memory_space<vmem>>, %arg15: memref<1x1x32xf32, #tpu.memory_space<vmem>>, %arg16: memref<1x1x32xf32, #tpu.memory_space<vmem>>, %arg17: memref<1x1x32xf32, #tpu.memory_space<vmem>>, %arg18: memref<1x1x32xf32, #tpu.memory_space<vmem>>, %arg19: memref<8x32xf32, #tpu.memory_space<vmem>>) attributes {dimension_semantics = [#tpu.dimension_semantics<parallel>, #tpu.dimension_semantics<arbitrary>], iteration_bounds = array<i64: 2, 2>, scalar_prefetch = 0 : i64, scratch_operands = 1 : i64, tpu.core_type = #tpu.core_type<tc>, window_params = [{transform_indices = @transform_0, window_bounds = array<i64: 1, 8, 32>}, {transform_indices = @transform_1, window_bounds = array<i64: 1, 1, 8>}, {pipeline_mode = #tpu.pipeline_mode<synchronous>, transform_indices = @transform_2, window_bounds = array<i64: 1, 32>}, {pipeline_mode = #tpu.pipeline_mode<synchronous>, transform_indices = @transform_3, window_bounds = array<i64: 1, 32>}, {transform_indices = @transform_4, window_bounds = array<i64: 1, 32, 96>}, {transform_indices = @transform_5, window_bounds = array<i64: 1, 1, 96>}, {transform_indices = @transform_6, window_bounds = array<i64: 1, 32, 32>}, {transform_indices = @transform_7, window_bounds = array<i64: 1, 1, 32>}, {transform_indices = @transform_8, window_bounds = array<i64: 1, 1, 32>}, {transform_indices = @transform_9, window_bounds = array<i64: 1, 1, 32>}, {transform_indices = @transform_10, window_bounds = array<i64: 1, 32, 64>}, {transform_indices = @transform_11, window_bounds = array<i64: 1, 1, 64>}, {transform_indices = @transform_12, window_bounds = array<i64: 1, 64, 32>}, {transform_indices = @transform_13, window_bounds = array<i64: 1, 1, 32>}, {transform_indices = @transform_14, window_bounds = array<i64: 1, 1, 32>}, {transform_indices = @transform_15, window_bounds = array<i64: 1, 1, 32>}, {transform_indices = @transform_16, window_bounds = array<i64: 1, 1, 32>}]} {
    %c0_i32 = arith.constant 0 : i32
    %0 = arith.cmpi eq, %arg1, %c0_i32 : i32
    %1 = arith.extui %0 : i1 to i32
    %c0_i32_0 = arith.constant 0 : i32
    %2 = arith.cmpi ne, %1, %c0_i32_0 : i32
    scf.if %2 {
      %c0_66 = arith.constant 0 : index
      %c0_67 = arith.constant 0 : index
      %c0_68 = arith.constant 0 : index
      %135 = vector.load %arg2[%c0_66, %c0_67, %c0_68] : memref<1x8x32xf32, #tpu.memory_space<vmem>>, vector<1x8x32xf32>
      %136 = vector.shape_cast %135 : vector<1x8x32xf32> to vector<8x32xf32>
      %c0_69 = arith.constant 0 : index
      %c0_70 = arith.constant 0 : index
      %137 = vector.load %arg4[%c0_69, %c0_70] : memref<1x32xf32, #tpu.memory_space<vmem>>, vector<1x32xf32>
      %c0_71 = arith.constant 0 : index
      %c0_72 = arith.constant 0 : index
      %138 = vector.load %arg5[%c0_71, %c0_72] : memref<1x32xf32, #tpu.memory_space<vmem>>, vector<1x32xf32>
      %cst_73 = arith.constant dense<0.000000e+00> : vector<8xf32>
      %139 = vector.multi_reduction <add>, %136, %cst_73 [1] : vector<8x32xf32> to vector<8xf32>
      %140 = vector.shape_cast %139 : vector<8xf32> to vector<8x1xf32>
      %cst_74 = arith.constant 3.125000e-02 : f32
      %141 = vector.broadcast %cst_74 : f32 to vector<8x1xf32>
      %142 = arith.mulf %140, %141 : vector<8x1xf32>
      %143 = arith.mulf %136, %136 : vector<8x32xf32>
      %cst_75 = arith.constant dense<0.000000e+00> : vector<8xf32>
      %144 = vector.multi_reduction <add>, %143, %cst_75 [1] : vector<8x32xf32> to vector<8xf32>
      %145 = vector.shape_cast %144 : vector<8xf32> to vector<8x1xf32>
      %cst_76 = arith.constant 3.125000e-02 : f32
      %146 = vector.broadcast %cst_76 : f32 to vector<8x1xf32>
      %147 = arith.mulf %145, %146 : vector<8x1xf32>
      %148 = arith.mulf %142, %142 : vector<8x1xf32>
      %149 = arith.subf %147, %148 : vector<8x1xf32>
      %150 = vector.broadcast %142 : vector<8x1xf32> to vector<8x32xf32>
      %151 = arith.subf %136, %150 : vector<8x32xf32>
      %cst_77 = arith.constant 9.99999996E-13 : f32
      %152 = vector.broadcast %cst_77 : f32 to vector<8x1xf32>
      %153 = arith.addf %149, %152 : vector<8x1xf32>
      %154 = math.rsqrt %153 : vector<8x1xf32>
      %155 = vector.broadcast %154 : vector<8x1xf32> to vector<8x32xf32>
      %156 = arith.mulf %151, %155 : vector<8x32xf32>
      %157 = vector.broadcast %137 : vector<1x32xf32> to vector<8x32xf32>
      %158 = arith.mulf %156, %157 : vector<8x32xf32>
      %159 = vector.broadcast %138 : vector<1x32xf32> to vector<8x32xf32>
      %160 = arith.addf %158, %159 : vector<8x32xf32>
      %c0_78 = arith.constant 0 : index
      %c0_79 = arith.constant 0 : index
      %161 = vector.load %arg19[%c0_78, %c0_79] : memref<8x32xf32, #tpu.memory_space<vmem>>, vector<8x32xf32>
      tpu.vector_store %arg19[%c0_78, %c0_79], %160 {strides = array<i32>} : memref<8x32xf32, #tpu.memory_space<vmem>>, vector<8x32xf32>,
    } else {
    }
    %c0 = arith.constant 0 : index
    %c0_1 = arith.constant 0 : index
    %3 = vector.load %arg19[%c0, %c0_1] : memref<8x32xf32, #tpu.memory_space<vmem>>, vector<8x32xf32>
    %c0_2 = arith.constant 0 : index
    %c0_3 = arith.constant 0 : index
    %c0_4 = arith.constant 0 : index
    %4 = vector.load %arg3[%c0_2, %c0_3, %c0_4] : memref<1x1x8xf32, #tpu.memory_space<vmem>>, vector<1x1x8xf32>
    %5 = vector.shape_cast %4 : vector<1x1x8xf32> to vector<1x8xf32>
    %6 = arith.truncf %3 : vector<8x32xf32> to vector<8x32xbf16>
    %c0_5 = arith.constant 0 : index
    %c0_6 = arith.constant 0 : index
    %c0_7 = arith.constant 0 : index
    %7 = vector.load %arg6[%c0_5, %c0_6, %c0_7] : memref<1x32x96xbf16, #tpu.memory_space<vmem>>, vector<1x32x96xbf16>
    %8 = vector.shape_cast %7 : vector<1x32x96xbf16> to vector<32x96xbf16>
    %cst = arith.constant dense<0.000000e+00> : vector<8x96xf32>
    %9 = tpu.matmul %6, %8, %cst {dimension_numbers = #tpu.dot_dimension_numbers<[1], [0], [0], [1], [0, 0, 1, 1], [], []>} : vector<8x32xbf16>, vector<32x96xbf16>, vector<8x96xf32> -> vector<8x96xf32>
    %c0_8 = arith.constant 0 : index
    %c0_9 = arith.constant 0 : index
    %c0_10 = arith.constant 0 : index
    %10 = vector.load %arg7[%c0_8, %c0_9, %c0_10] : memref<1x1x96xf32, #tpu.memory_space<vmem>>, vector<1x1x96xf32>
    %11 = vector.shape_cast %10 : vector<1x1x96xf32> to vector<1x96xf32>
    %12 = vector.broadcast %11 : vector<1x96xf32> to vector<8x96xf32>
    %13 = arith.addf %9, %12 : vector<8x96xf32>
    %14 = vector.shape_cast %13 : vector<8x96xf32> to vector<8x6x16xf32>
    %15 = tpu.transpose %14, [1, 0, 2] : vector<8x6x16xf32> -> vector<6x8x16xf32>
    %16 = arith.truncf %15 : vector<6x8x16xf32> to vector<6x8x16xbf16>
    %17 = vector.extract_strided_slice %16 {offsets = [0, 0, 0], sizes = [2, 8, 16], strides = [1, 1, 1]} : vector<6x8x16xbf16> to vector<2x8x16xbf16>
    %18 = vector.extract_strided_slice %16 {offsets = [2, 0, 0], sizes = [2, 8, 16], strides = [1, 1, 1]} : vector<6x8x16xbf16> to vector<2x8x16xbf16>
    %19 = vector.extract_strided_slice %16 {offsets = [4, 0, 0], sizes = [2, 8, 16], strides = [1, 1, 1]} : vector<6x8x16xbf16> to vector<2x8x16xbf16>
    "tpu.trace_start"() <{level = 10 : i32, message = "hqd,hkd->hqk"}> : () -> ()
    %cst_11 = arith.constant dense<0.000000e+00> : vector<2x8x8xf32>
    %20 = tpu.matmul %17, %18, %cst_11 {dimension_numbers = #tpu.dot_dimension_numbers<[2], [2], [1], [1], [0, 0, 0, 1, 1, 1], [0], [0]>} : vector<2x8x16xbf16>, vector<2x8x16xbf16>, vector<2x8x8xf32> -> vector<2x8x8xf32>
    "tpu.trace_stop"() : () -> ()
    %cst_12 = arith.constant 2.500000e-01 : f32
    %21 = vector.broadcast %cst_12 : f32 to vector<2x8x8xf32>
    %22 = arith.mulf %20, %21 : vector<2x8x8xf32>
    %23 = vector.shape_cast %5 : vector<1x8xf32> to vector<1x1x8xf32>
    %24 = vector.broadcast %23 : vector<1x1x8xf32> to vector<2x8x8xf32>
    %25 = arith.addf %22, %24 : vector<2x8x8xf32>
    %cst_13 = arith.constant dense<0xFF800000> : vector<2x8xf32>
    %26 = vector.multi_reduction <maximumf>, %25, %cst_13 [2] : vector<2x8x8xf32> to vector<2x8xf32>
    %27 = vector.shape_cast %26 : vector<2x8xf32> to vector<2x8x1xf32>
    %28 = vector.broadcast %27 : vector<2x8x1xf32> to vector<2x8x8xf32>
    %29 = arith.subf %25, %28 : vector<2x8x8xf32>
    %30 = math.exp %29 : vector<2x8x8xf32>
    %cst_14 = arith.constant dense<0.000000e+00> : vector<2x8xf32>
    %31 = vector.multi_reduction <add>, %30, %cst_14 [2] : vector<2x8x8xf32> to vector<2x8xf32>
    %32 = vector.shape_cast %31 : vector<2x8xf32> to vector<2x8x1xf32>
    %33 = tpu.reciprocal %32 {approx = true} : vector<2x8x1xf32> -> vector<2x8x1xf32>
    %34 = vector.broadcast %33 : vector<2x8x1xf32> to vector<2x8x8xf32>
    %35 = arith.mulf %30, %34 : vector<2x8x8xf32>
    %36 = arith.truncf %35 : vector<2x8x8xf32> to vector<2x8x8xbf16>
    "tpu.trace_start"() <{level = 10 : i32, message = "hqk,hkd->hqd"}> : () -> ()
    %cst_15 = arith.constant dense<0.000000e+00> : vector<2x8x16xf32>
    %37 = tpu.matmul %36, %19, %cst_15 {dimension_numbers = #tpu.dot_dimension_numbers<[2], [1], [1], [2], [0, 0, 0, 1, 1, 2], [0], [0]>} : vector<2x8x8xbf16>, vector<2x8x16xbf16>, vector<2x8x16xf32> -> vector<2x8x16xf32>
    "tpu.trace_stop"() : () -> ()
    %38 = tpu.transpose %37, [1, 0, 2] : vector<2x8x16xf32> -> vector<8x2x16xf32>
    %39 = vector.shape_cast %38 : vector<8x2x16xf32> to vector<8x32xf32>
    %40 = arith.truncf %39 : vector<8x32xf32> to vector<8x32xbf16>
    %c0_16 = arith.constant 0 : index
    %c0_17 = arith.constant 0 : index
    %c0_18 = arith.constant 0 : index
    %41 = vector.load %arg8[%c0_16, %c0_17, %c0_18] : memref<1x32x32xbf16, #tpu.memory_space<vmem>>, vector<1x32x32xbf16>
    %42 = vector.shape_cast %41 : vector<1x32x32xbf16> to vector<32x32xbf16>
    %cst_19 = arith.constant dense<0.000000e+00> : vector<8x32xf32>
    %43 = tpu.matmul %40, %42, %cst_19 {dimension_numbers = #tpu.dot_dimension_numbers<[1], [0], [0], [1], [0, 0, 1, 1], [], []>} : vector<8x32xbf16>, vector<32x32xbf16>, vector<8x32xf32> -> vector<8x32xf32>
    %c0_20 = arith.constant 0 : index
    %c0_21 = arith.constant 0 : index
    %c0_22 = arith.constant 0 : index
    %44 = vector.load %arg9[%c0_20, %c0_21, %c0_22] : memref<1x1x32xf32, #tpu.memory_space<vmem>>, vector<1x1x32xf32>
    %45 = vector.shape_cast %44 : vector<1x1x32xf32> to vector<1x32xf32>
    %46 = vector.broadcast %45 : vector<1x32xf32> to vector<8x32xf32>
    %47 = arith.addf %43, %46 : vector<8x32xf32>
    %48 = arith.addf %3, %47 : vector<8x32xf32>
    %c0_23 = arith.constant 0 : index
    %c0_24 = arith.constant 0 : index
    %c0_25 = arith.constant 0 : index
    %49 = vector.load %arg10[%c0_23, %c0_24, %c0_25] : memref<1x1x32xf32, #tpu.memory_space<vmem>>, vector<1x1x32xf32>
    %50 = vector.shape_cast %49 : vector<1x1x32xf32> to vector<1x32xf32>
    %c0_26 = arith.constant 0 : index
    %c0_27 = arith.constant 0 : index
    %c0_28 = arith.constant 0 : index
    %51 = vector.load %arg11[%c0_26, %c0_27, %c0_28] : memref<1x1x32xf32, #tpu.memory_space<vmem>>, vector<1x1x32xf32>
    %52 = vector.shape_cast %51 : vector<1x1x32xf32> to vector<1x32xf32>
    %cst_29 = arith.constant dense<0.000000e+00> : vector<8xf32>
    %53 = vector.multi_reduction <add>, %48, %cst_29 [1] : vector<8x32xf32> to vector<8xf32>
    %54 = vector.shape_cast %53 : vector<8xf32> to vector<8x1xf32>
    %cst_30 = arith.constant 3.125000e-02 : f32
    %55 = vector.broadcast %cst_30 : f32 to vector<8x1xf32>
    %56 = arith.mulf %54, %55 : vector<8x1xf32>
    %57 = arith.mulf %48, %48 : vector<8x32xf32>
    %cst_31 = arith.constant dense<0.000000e+00> : vector<8xf32>
    %58 = vector.multi_reduction <add>, %57, %cst_31 [1] : vector<8x32xf32> to vector<8xf32>
    %59 = vector.shape_cast %58 : vector<8xf32> to vector<8x1xf32>
    %cst_32 = arith.constant 3.125000e-02 : f32
    %60 = vector.broadcast %cst_32 : f32 to vector<8x1xf32>
    %61 = arith.mulf %59, %60 : vector<8x1xf32>
    %62 = arith.mulf %56, %56 : vector<8x1xf32>
    %63 = arith.subf %61, %62 : vector<8x1xf32>
    %64 = vector.broadcast %56 : vector<8x1xf32> to vector<8x32xf32>
    %65 = arith.subf %48, %64 : vector<8x32xf32>
    %cst_33 = arith.constant 9.99999996E-13 : f32
    %66 = vector.broadcast %cst_33 : f32 to vector<8x1xf32>
    %67 = arith.addf %63, %66 : vector<8x1xf32>
    %68 = math.rsqrt %67 : vector<8x1xf32>
    %69 = vector.broadcast %68 : vector<8x1xf32> to vector<8x32xf32>
    %70 = arith.mulf %65, %69 : vector<8x32xf32>
    %71 = vector.broadcast %50 : vector<1x32xf32> to vector<8x32xf32>
    %72 = arith.mulf %70, %71 : vector<8x32xf32>
    %73 = vector.broadcast %52 : vector<1x32xf32> to vector<8x32xf32>
    %74 = arith.addf %72, %73 : vector<8x32xf32>
    %75 = arith.truncf %74 : vector<8x32xf32> to vector<8x32xbf16>
    %c0_34 = arith.constant 0 : index
    %c0_35 = arith.constant 0 : index
    %c0_36 = arith.constant 0 : index
    %76 = vector.load %arg12[%c0_34, %c0_35, %c0_36] : memref<1x32x64xbf16, #tpu.memory_space<vmem>>, vector<1x32x64xbf16>
    %77 = vector.shape_cast %76 : vector<1x32x64xbf16> to vector<32x64xbf16>
    %cst_37 = arith.constant dense<0.000000e+00> : vector<8x64xf32>
    %78 = tpu.matmul %75, %77, %cst_37 {dimension_numbers = #tpu.dot_dimension_numbers<[1], [0], [0], [1], [0, 0, 1, 1], [], []>} : vector<8x32xbf16>, vector<32x64xbf16>, vector<8x64xf32> -> vector<8x64xf32>
    %c0_38 = arith.constant 0 : index
    %c0_39 = arith.constant 0 : index
    %c0_40 = arith.constant 0 : index
    %79 = vector.load %arg13[%c0_38, %c0_39, %c0_40] : memref<1x1x64xf32, #tpu.memory_space<vmem>>, vector<1x1x64xf32>
    %80 = vector.shape_cast %79 : vector<1x1x64xf32> to vector<1x64xf32>
    %81 = vector.broadcast %80 : vector<1x64xf32> to vector<8x64xf32>
    %82 = arith.addf %78, %81 : vector<8x64xf32>
    %83 = arith.mulf %82, %82 : vector<8x64xf32>
    %84 = arith.mulf %82, %83 : vector<8x64xf32>
    %cst_41 = arith.constant 4.471500e-02 : f32
    %85 = vector.broadcast %cst_41 : f32 to vector<8x64xf32>
    %86 = arith.mulf %85, %84 : vector<8x64xf32>
    %87 = arith.addf %82, %86 : vector<8x64xf32>
    %cst_42 = arith.constant 0.797884583 : f32
    %88 = vector.broadcast %cst_42 : f32 to vector<8x64xf32>
    %89 = arith.mulf %88, %87 : vector<8x64xf32>
    %90 = math.tanh %89 : vector<8x64xf32>
    %cst_43 = arith.constant 1.000000e+00 : f32
    %91 = vector.broadcast %cst_43 : f32 to vector<8x64xf32>
    %92 = arith.addf %91, %90 : vector<8x64xf32>
    %cst_44 = arith.constant 5.000000e-01 : f32
    %93 = vector.broadcast %cst_44 : f32 to vector<8x64xf32>
    %94 = arith.mulf %93, %92 : vector<8x64xf32>
    %95 = arith.mulf %82, %94 : vector<8x64xf32>
    %96 = arith.truncf %95 : vector<8x64xf32> to vector<8x64xbf16>
    %c0_45 = arith.constant 0 : index
    %c0_46 = arith.constant 0 : index
    %c0_47 = arith.constant 0 : index
    %97 = vector.load %arg14[%c0_45, %c0_46, %c0_47] : memref<1x64x32xbf16, #tpu.memory_space<vmem>>, vector<1x64x32xbf16>
    %98 = vector.shape_cast %97 : vector<1x64x32xbf16> to vector<64x32xbf16>
    %cst_48 = arith.constant dense<0.000000e+00> : vector<8x32xf32>
    %99 = tpu.matmul %96, %98, %cst_48 {dimension_numbers = #tpu.dot_dimension_numbers<[1], [0], [0], [1], [0, 0, 1, 1], [], []>} : vector<8x64xbf16>, vector<64x32xbf16>, vector<8x32xf32> -> vector<8x32xf32>
    %c0_49 = arith.constant 0 : index
    %c0_50 = arith.constant 0 : index
    %c0_51 = arith.constant 0 : index
    %100 = vector.load %arg15[%c0_49, %c0_50, %c0_51] : memref<1x1x32xf32, #tpu.memory_space<vmem>>, vector<1x1x32xf32>
    %101 = vector.shape_cast %100 : vector<1x1x32xf32> to vector<1x32xf32>
    %102 = vector.broadcast %101 : vector<1x32xf32> to vector<8x32xf32>
    %103 = arith.addf %99, %102 : vector<8x32xf32>
    %104 = arith.addf %74, %103 : vector<8x32xf32>
    %c0_52 = arith.constant 0 : index
    %c0_53 = arith.constant 0 : index
    %c0_54 = arith.constant 0 : index
    %105 = vector.load %arg16[%c0_52, %c0_53, %c0_54] : memref<1x1x32xf32, #tpu.memory_space<vmem>>, vector<1x1x32xf32>
    %106 = vector.shape_cast %105 : vector<1x1x32xf32> to vector<1x32xf32>
    %c0_55 = arith.constant 0 : index
    %c0_56 = arith.constant 0 : index
    %c0_57 = arith.constant 0 : index
    %107 = vector.load %arg17[%c0_55, %c0_56, %c0_57] : memref<1x1x32xf32, #tpu.memory_space<vmem>>, vector<1x1x32xf32>
    %108 = vector.shape_cast %107 : vector<1x1x32xf32> to vector<1x32xf32>
    %cst_58 = arith.constant dense<0.000000e+00> : vector<8xf32>
    %109 = vector.multi_reduction <add>, %104, %cst_58 [1] : vector<8x32xf32> to vector<8xf32>
    %110 = vector.shape_cast %109 : vector<8xf32> to vector<8x1xf32>
    %cst_59 = arith.constant 3.125000e-02 : f32
    %111 = vector.broadcast %cst_59 : f32 to vector<8x1xf32>
    %112 = arith.mulf %110, %111 : vector<8x1xf32>
    %113 = arith.mulf %104, %104 : vector<8x32xf32>
    %cst_60 = arith.constant dense<0.000000e+00> : vector<8xf32>
    %114 = vector.multi_reduction <add>, %113, %cst_60 [1] : vector<8x32xf32> to vector<8xf32>
    %115 = vector.shape_cast %114 : vector<8xf32> to vector<8x1xf32>
    %cst_61 = arith.constant 3.125000e-02 : f32
    %116 = vector.broadcast %cst_61 : f32 to vector<8x1xf32>
    %117 = arith.mulf %115, %116 : vector<8x1xf32>
    %118 = arith.mulf %112, %112 : vector<8x1xf32>
    %119 = arith.subf %117, %118 : vector<8x1xf32>
    %120 = vector.broadcast %112 : vector<8x1xf32> to vector<8x32xf32>
    %121 = arith.subf %104, %120 : vector<8x32xf32>
    %cst_62 = arith.constant 9.99999996E-13 : f32
    %122 = vector.broadcast %cst_62 : f32 to vector<8x1xf32>
    %123 = arith.addf %119, %122 : vector<8x1xf32>
    %124 = math.rsqrt %123 : vector<8x1xf32>
    %125 = vector.broadcast %124 : vector<8x1xf32> to vector<8x32xf32>
    %126 = arith.mulf %121, %125 : vector<8x32xf32>
    %127 = vector.broadcast %106 : vector<1x32xf32> to vector<8x32xf32>
    %128 = arith.mulf %126, %127 : vector<8x32xf32>
    %129 = vector.broadcast %108 : vector<1x32xf32> to vector<8x32xf32>
    %130 = arith.addf %128, %129 : vector<8x32xf32>
    %c0_63 = arith.constant 0 : index
    %c0_64 = arith.constant 0 : index
    %131 = vector.load %arg19[%c0_63, %c0_64] : memref<8x32xf32, #tpu.memory_space<vmem>>, vector<8x32xf32>
    tpu.vector_store %arg19[%c0_63, %c0_64], %130 {strides = array<i32>} : memref<8x32xf32, #tpu.memory_space<vmem>>, vector<8x32xf32>,
    %c1_i32 = arith.constant 1 : i32
    %132 = arith.cmpi eq, %arg1, %c1_i32 : i32
    %133 = arith.extui %132 : i1 to i32
    %c0_i32_65 = arith.constant 0 : i32
    %134 = arith.cmpi ne, %133, %c0_i32_65 : i32
    scf.if %134 {
      %135 = vector.extract_strided_slice %130 {offsets = [0, 0], sizes = [1, 32], strides = [1, 1]} : vector<8x32xf32> to vector<1x32xf32>
      %136 = vector.shape_cast %135 : vector<1x32xf32> to vector<1x1x32xf32>
      %c0_66 = arith.constant 0 : index
      %c0_67 = arith.constant 0 : index
      %c0_68 = arith.constant 0 : index
      %137 = vector.load %arg18[%c0_66, %c0_67, %c0_68] : memref<1x1x32xf32, #tpu.memory_space<vmem>>, vector<1x1x32xf32>
      tpu.vector_store %arg18[%c0_66, %c0_67, %c0_68], %136 {strides = array<i32>} : memref<1x1x32xf32, #tpu.memory_space<vmem>>, vector<1x1x32xf32>,
    } else {
    }
    return
  }
  func.func @transform_0(%arg0: i32, %arg1: i32) -> (i32, i32, i32) {
    %c0_i32 = arith.constant 0 : i32
    %c0_i32_0 = arith.constant 0 : i32
    %c0_i32_1 = arith.constant 0 : i32
    return %arg0, %c0_i32, %c0_i32_0 : i32, i32, i32
  }
  func.func @transform_1(%arg0: i32, %arg1: i32) -> (i32, i32, i32) {
    %c0_i32 = arith.constant 0 : i32
    %c0_i32_0 = arith.constant 0 : i32
    %c0_i32_1 = arith.constant 0 : i32
    return %arg0, %c0_i32, %c0_i32_0 : i32, i32, i32
  }
  func.func @transform_2(%arg0: i32, %arg1: i32) -> (i32, i32) {
    %c0_i32 = arith.constant 0 : i32
    %c0_i32_0 = arith.constant 0 : i32
    %c0_i32_1 = arith.constant 0 : i32
    return %c0_i32, %c0_i32_0 : i32, i32
  }
  func.func @transform_3(%arg0: i32, %arg1: i32) -> (i32, i32) {
    %c0_i32 = arith.constant 0 : i32
    %c0_i32_0 = arith.constant 0 : i32
    %c0_i32_1 = arith.constant 0 : i32
    return %c0_i32, %c0_i32_0 : i32, i32
  }
  func.func @transform_4(%arg0: i32, %arg1: i32) -> (i32, i32, i32) {
    %c0_i32 = arith.constant 0 : i32
    %c0_i32_0 = arith.constant 0 : i32
    %c0_i32_1 = arith.constant 0 : i32
    return %arg1, %c0_i32, %c0_i32_0 : i32, i32, i32
  }
  func.func @transform_5(%arg0: i32, %arg1: i32) -> (i32, i32, i32) {
    %c0_i32 = arith.constant 0 : i32
    %c0_i32_0 = arith.constant 0 : i32
    %c0_i32_1 = arith.constant 0 : i32
    return %arg1, %c0_i32, %c0_i32_0 : i32, i32, i32
  }
  func.func @transform_6(%arg0: i32, %arg1: i32) -> (i32, i32, i32) {
    %c0_i32 = arith.constant 0 : i32
    %c0_i32_0 = arith.constant 0 : i32
    %c0_i32_1 = arith.constant 0 : i32
    return %arg1, %c0_i32, %c0_i32_0 : i32, i32, i32
  }
  func.func @transform_7(%arg0: i32, %arg1: i32) -> (i32, i32, i32) {
    %c0_i32 = arith.constant 0 : i32
    %c0_i32_0 = arith.constant 0 : i32
    %c0_i32_1 = arith.constant 0 : i32
    return %arg1, %c0_i32, %c0_i32_0 : i32, i32, i32
  }
  func.func @transform_8(%arg0: i32, %arg1: i32) -> (i32, i32, i32) {
    %c0_i32 = arith.constant 0 : i32
    %c0_i32_0 = arith.constant 0 : i32
    %c0_i32_1 = arith.constant 0 : i32
    return %arg1, %c0_i32, %c0_i32_0 : i32, i32, i32
  }
  func.func @transform_9(%arg0: i32, %arg1: i32) -> (i32, i32, i32) {
    %c0_i32 = arith.constant 0 : i32
    %c0_i32_0 = arith.constant 0 : i32
    %c0_i32_1 = arith.constant 0 : i32
    return %arg1, %c0_i32, %c0_i32_0 : i32, i32, i32
  }
  func.func @transform_10(%arg0: i32, %arg1: i32) -> (i32, i32, i32) {
    %c0_i32 = arith.constant 0 : i32
    %c0_i32_0 = arith.constant 0 : i32
    %c0_i32_1 = arith.constant 0 : i32
    return %arg1, %c0_i32, %c0_i32_0 : i32, i32, i32
  }
  func.func @transform_11(%arg0: i32, %arg1: i32) -> (i32, i32, i32) {
    %c0_i32 = arith.constant 0 : i32
    %c0_i32_0 = arith.constant 0 : i32
    %c0_i32_1 = arith.constant 0 : i32
    return %arg1, %c0_i32, %c0_i32_0 : i32, i32, i32
  }
  func.func @transform_12(%arg0: i32, %arg1: i32) -> (i32, i32, i32) {
    %c0_i32 = arith.constant 0 : i32
    %c0_i32_0 = arith.constant 0 : i32
    %c0_i32_1 = arith.constant 0 : i32
    return %arg1, %c0_i32, %c0_i32_0 : i32, i32, i32
  }
  func.func @transform_13(%arg0: i32, %arg1: i32) -> (i32, i32, i32) {
    %c0_i32 = arith.constant 0 : i32
    %c0_i32_0 = arith.constant 0 : i32
    %c0_i32_1 = arith.constant 0 : i32
    return %arg1, %c0_i32, %c0_i32_0 : i32, i32, i32
  }
  func.func @transform_14(%arg0: i32, %arg1: i32) -> (i32, i32, i32) {
    %c0_i32 = arith.constant 0 : i32
    %c0_i32_0 = arith.constant 0 : i32
    %c0_i32_1 = arith.constant 0 : i32
    return %arg1, %c0_i32, %c0_i32_0 : i32, i32, i32
  }
  func.func @transform_15(%arg0: i32, %arg1: i32) -> (i32, i32, i32) {
    %c0_i32 = arith.constant 0 : i32
    %c0_i32_0 = arith.constant 0 : i32
    %c0_i32_1 = arith.constant 0 : i32
    return %arg1, %c0_i32, %c0_i32_0 : i32, i32, i32
  }
  func.func @transform_16(%arg0: i32, %arg1: i32) -> (i32, i32, i32) {
    %c0_i32 = arith.constant 0 : i32
    %c0_i32_0 = arith.constant 0 : i32
    %c0_i32_1 = arith.constant 0 : i32
    return %arg0, %c0_i32, %c0_i32_0 : i32, i32, i32
  }
}

</mosaic_0001>

<bundles_post_ra>
// kernel: bert_classifier_forward.1
= control target key start
LH: loop header
LB: loop body
LE: loop exit
PB: predicated region body
PF: predicated region fallthrough
CT: control target
= control target key end

     0   :  { %s2788_s0 = inlined_call_operand.vmem [shape: f32[2,8,32], index: 0, kind: input, shape index: {}]   ;;  %s2789_s1 = inlined_call_operand.vmem [shape: f32[2,1,8], index: 1, kind: input, shape index: {}]   ;;  %s2790_s2 = inlined_call_operand.vmem [shape: f32[1,32], index: 2, kind: input, shape index: {}]   ;;  %s2791_s3 = inlined_call_operand.vmem [shape: f32[1,32], index: 3, kind: input, shape index: {}]   ;;  %s2792_s4 = inlined_call_operand.vmem [shape: bf16[2,32,96], index: 4, kind: input, shape index: {}]   ;;  %s2793_s5 = inlined_call_operand.vmem [shape: f32[2,1,96], index: 5, kind: input, shape index: {}]   ;;  %s2794_s6 = inlined_call_operand.vmem [shape: bf16[2,32,32], index: 6, kind: input, shape index: {}]   ;;  %s2795_s7 = inlined_call_operand.vmem [shape: f32[2,1,32], index: 7, kind: input, shape index: {}]   ;;  %s2796_s8 = inlined_call_operand.vmem [shape: f32[2,1,32], index: 8, kind: input, shape index: {}]   ;;  %s2797_s9 = inlined_call_operand.vmem [shape: f32[2,1,32], index: 9, kind: input, shape index: {}]   ;;  %s2798_s10 = inlined_call_operand.vmem [shape: bf16[2,32,64], index: 10, kind: input, shape index: {}]   ;;  %s2799_s11 = inlined_call_operand.vmem [shape: f32[2,1,64], index: 11, kind: input, shape index: {}]   ;;  %s2800_s12 = inlined_call_operand.vmem [shape: bf16[2,64,32], index: 12, kind: input, shape index: {}]   ;;  %s2801_s13 = inlined_call_operand.vmem [shape: f32[2,1,32], index: 13, kind: input, shape index: {}]   ;;  %s2802_s14 = inlined_call_operand.vmem [shape: f32[2,1,32], index: 14, kind: input, shape index: {}]   ;;  %s2803_s15 = inlined_call_operand.vmem [shape: f32[2,1,32], index: 15, kind: input, shape index: {}]   ;;  %s2804_s16 = inlined_call_operand.hbm [shape: f32[2,1,32], index: 16, kind: output, shape index: {}]  }
   0x1   :  { %2818 = sst [smem:[#allocation18_spill]] %s2788_s0 }
   0x2   :  { %2819 = sst [smem:[#allocation19_spill]] %s2789_s1 }
   0x3   :  { %2820 = sst [smem:[#allocation20_spill]] %s2790_s2 }
   0x4   :  { %2821 = sst [smem:[#allocation21_spill]] %s2791_s3 }
   0x5   :  { %2822 = sst [smem:[#allocation22_spill]] %s2792_s4 }
   0x6   :  { %2823 = sst [smem:[#allocation23_spill]] %s2794_s6 }
   0x7   :  { %2824 = sst [smem:[#allocation24_spill]] %s2797_s9 }
   0x8   :  { %2825 = sst [smem:[#allocation25_spill]] %s2798_s10 }
   0x9   :  { %2826 = sst [smem:[#allocation26_spill]] %s2802_s14 }
   0xa   :  { %2827 = sst [smem:[#allocation27_spill]] %s2803_s15 }
   0xb   :  { %2828 = sst [smem:[#allocation28_spill]] %s2804_s16 }
   0xc   :  { %21 = vsyncpa [#allocation4], 0 }
   0xd   :  { %23 = vsyncpa [#allocation4 + $0x1], 0  ;;  %s2408_s21 = smov 0   ;;  %s2410_s22 = smov 0  }
   0xe   :  { %s2412_s23 = smov 0   ;;  %s2414_s24 = smov 0  }
   0xf   :  { %s2416_s25 = smov 0   ;;  %s2418_s26 = smov 0  }
  0x10   :  { %s2420_s27 = smov 0   ;;  %s2422_s28 = smov 0  }
  0x11 LB: > { %2829 = sst [smem:[#allocation6_spill]] %s2282_s21  ;;  %s1965_s29 = sadd.s32 4294967295, %s2310_s28   ;;  %s2310_s28 = sphi %s2422_s28, %s29_s28   ;;  %s2306_s27 = sphi %s2420_s27, %s2878_s27   ;;  %s2302_s26 = sphi %s2418_s26, %s2877_s26   ;;  %s2298_s25 = sphi %s2416_s25, %s2876_s25   ;;  %s2294_s24 = sphi %s2414_s24, %s2875_s24   ;;  %s2290_s23 = sphi %s2412_s23, %s2874_s23   ;;  %s2286_s22 = sphi %s2410_s22, %s2880_s22   ;;  %s2282_s21 = sphi %s2408_s21, %s2879_s21  }
  0x12   : > { %2830 = sst [smem:[#allocation7_spill]] %s2290_s23  ;;  %s1966_s30 = sadd.s32 4294967294, %s2310_s28  }
  0x13   : > { %2831 = sst [smem:[#allocation8_spill]] %s2294_s24  ;;  %s38_s0 = sadd.s32 1, %s2302_s26 }
  0x14   : > { %2832 = sst [smem:[#allocation9_spill]] %s2298_s25  ;;  %p39_p0 = scmp.ge.s32.totalorder %s38_s0, 2 }
  0x15   : > { %2833 = sst [smem:[#allocation10_spill]] %s2302_s26  ;;  %s41_s17 = sadd.s32 1, %s2306_s27 }
  0x16   : > { %2834 = sst [smem:[#allocation11_spill]] %s2306_s27  ;;  %p464_p1 = scmp.ne.s32.totalorder %s2290_s23, %s2286_s22 }
  0x17   : > { %2835 = sst [smem:[#allocation12_spill]] %s2310_s28  ;;  %p465_p2 = scmp.eq.s32.totalorder %s1965_s29, 3 }
  0x18   : > { %s2882_s0 = smov (%p39_p0, %s38_s0), 0  ;;  %s2884_s17 = smov (!%p39_p0, %s41_s17), %s2306_s27 }
  0x19   : > { %2836 = sst [smem:[#allocation13_spill]] %s2882_s0  ;;  %p2457_p3 = por %p465_p2, %p464_p1 }
  0x1a   : > { %p470_p4 = scmp.ne.s32.totalorder %s2286_s22, %s2282_s21  ;;  %p43_p5 = scmp.ge.s32.totalorder %s2884_s17, 2 }
  0x1b   : > { %s2837_s18 = scalar_select %p2457_p3, 1, 0 }
  0x1c   : > { %p471_p6 = scmp.eq.s32.totalorder %s1966_s30, 3  ;;  %p1969_p7 = scmp.ge.s32.totalorder %s2310_s28, 1 }
  0x1d   : > { %2838 = sst [smem:[#allocation14_spill]] %s2837_s18  ;;  %p588_p8 = scmp.lt.s32.totalorder %s2310_s28, 5 }
  0x1e   : > { %s2886_s17 = smov (%p43_p5, %s2884_s17), 0  ;;  %p2467_p9 = por %p471_p6, %p470_p4 }
  0x1f   : > { %2839 = sst [smem:[#allocation15_spill]] %s2886_s17  ;;  %p589_p10 = pnand %p1969_p7, %p588_p8 }
  0x20   : > { %s2840_s19 = scalar_select %p2467_p9, 1, 0 }
  0x21   : > { %s451_s20 = ssub.s32 %s2306_s27, %s2886_s17  ;;  %s454_s29 = sadd.s32 1, %s2290_s23 }
  0x22   : > { %2841 = sst [smem:[#allocation16_spill]] %s2840_s19  ;;  %p452_p11 = scmp.eq.s32.totalorder %s451_s20, 0 }
  0x23   : > { %592 = sbr.rel (%p589_p10) target bundleno = 2531 (0x9e3), region = 84  ;;  %p683_p12 = scmp.lt.s32.totalorder (!%p589_p10), %s2298_s25, 1 }
  0x24   : > { %s2475_s0 = scalar_select %p452_p11, %s2290_s23, %s454_s29  }
  0x25   : > { %p690_p13 = scmp.lt.s32.totalorder (!%p589_p10), %s2294_s24, 1  ;;  %s2844_s23 = sld [smem:[#allocation18_spill]] (!%p589_p10) }
  0x26   : > { %2842 = sst [smem:[#allocation17_spill]] %s2475_s0  ;;  %s2845_s4 = sld [smem:[#allocation22_spill]] (!%p589_p10) }
  0x27   : > { %s2846_s6 = sld [smem:[#allocation23_spill]] (!%p589_p10)  ;;  %s2848_s10 = sld [smem:[#allocation25_spill]] (!%p589_p10) }
  0x28   : > { %s2851_s14 = sand.u32 (!%p589_p10), 1, %s2286_s22  }
  0x29   : > { %s2550_s15 = scalar_lea.vmem (!%p589_p10), [#allocation3], %s2851_s14 }
  0x2a   : > { %s2481_s26 = scalar_select %p683_p12, %s2298_s25, 1 }
  0x2b   : > { %s2484_s19 = scalar_select %p690_p13, %s2294_s24, 1 }
  0x2c   : > { %s1970_s20 = sshll.u32 %s2481_s26, 3  ;;  %s2852_s24 = sld [smem:[#allocation8_spill]] }
  0x2d   : > { %s686_s21 = scalar_lea.vmem %s2844_s23, %s1970_s20  ;;  %s2023_s28 = sshll.u32 %s2484_s19, 4 }
  0x2e   : > { %s2498_s25 = scalar_lea.vmem %s2845_s4, %s2023_s28  ;;  %s2507_s30 = scalar_lea.vmem %s2846_s6, %s2023_s28 }
  0x2f   : > { %s2524_s3 = scalar_lea.vmem %s2848_s10, %s2023_s28  ;;  %s2026_s6 = sshll.u32 %s2484_s19, 5 }
  0x30   : > { %s727_s27 = scalar_lea.vmem %s2801_s13, %s2484_s19  ;;  %s2538_s20 = scalar_lea.vmem %s2800_s12, %s2026_s6 }
  0x31   : > { %s2849_s4 = sld [smem:[#allocation26_spill]]  ;;  %s2850_s10 = sld [smem:[#allocation27_spill]] }
  0x32   : > { %p1979_p0 = scmp.ne.s32.totalorder %s2852_s24, 0 }
  0x33   : > { %v739_v0 = vld [vmem:[%s686_s21] sm:$0xff] (!%p1979_p0)  ;;  %vm742_vm0 = vcmask (!%p1979_p0), 261120   ;;  %s2854_s17 = sld [smem:[#allocation21_spill]] (!%p1979_p0) }
  0x34   : > { %738 = sbr.rel (%p1979_p0) target bundleno = 223 (0xdf), region = 88  ;;  %v743_v1 = vsel (!%p1979_p0), %vm742_vm0, %v739_v0, 0.0  ;;  %v747_v2 = vmul.f32 (!%p1979_p0), %v739_v0, %v739_v0 }
  0x35   : > { %744 = vadd.xlane.f32.xlu0 (!%p1979_p0), %v743_v1 }
  0x36   : > { %v748_v3 = vsel (!%p1979_p0), %vm742_vm0, %v747_v2, 0.0 }
  0x37   : > { %s730_s1 = scalar_lea.vmem %s2849_s4, %s2484_s19  ;;  %s733_s9 = scalar_lea.vmem %s2850_s10, %s2484_s19 }
  0x38   : > { %s2853_s10 = sld [smem:[#allocation20_spill]] (!%p1979_p0) }
  0x39   : > { %749 = vadd.xlane.f32.xlu0 (!%p1979_p0), %v748_v3  ;;  %v1981_v15 = vld [vmem:[%s2854_s17] ss:$0 sm:$0xff] (!%p1979_p0) }
  0x3e   : > { %v1980_v13 = vld [vmem:[%s2853_s10] ss:$0 sm:$0xff] }
  0xc2   : > { %v745_v4 = vpop.xlane.xlu0 %744 }
  0xc3   : > { %v746_v5 = vmul.f32 0.03125, %v745_v4 }
  0xc5   : > { %v752_v7 = vmul.f32 %v746_v5, %v746_v5  ;;  %v754_v11 = vsub.f32 %v739_v0, %v746_v5 }
  0xc6   : > { %v750_v6 = vpop.xlane.xlu0 %749 }
  0xc7   : > { %v751_v8 = vmul.f32 0.03125, %v750_v6 }
  0xc9   : > { %v753_v9 = vsub.f32 %v751_v8, %v752_v7 }
  0xcb   : > { %v755_v10 = vadd.f32 1e-12, %v753_v9 }
  0xcd   : > { %2190 = vrsqrt.f32 %v755_v10 }
  0xd7   : > { %v2191_v12 = vpop.eup %2190 }
  0xd8   : > { %v757_v14 = vmul.f32 %v2191_v12, %v754_v11 }
  0xda   : > { %v764_v16 = vmul.f32 %v1980_v13, %v757_v14 }
  0xdc   : > { %v771_v17 = vadd.f32 %v1981_v15, %v764_v16 }
  0xde   : > { %772 = vst.msk [vmem:[#allocation2] sm:$0xff] %vm742_vm0, %v771_v17 }
  0xdf PF: > { %v2192_v18 = vld [vmem:[%s2498_s25] sm:$0xff]   ;;  %v2312_v19 = vmov 0.0   ;;  %v2193_v20 = vld [vmem:[%s2498_s25 + $0x8] sm:$0xff]   ;;  %vm2313_vm1 = vmmov 0   ;;  %vm799_vm2 = vcmask 261120   ;;  %s2855_s23 = scalar_lea.vmem %s2793_s5, %s2484_s19  ;;  %s2314_s0 = smov 80   ;;  %v864_v31 = vlaneseq }
  0xe0   : > { %2049 = vmatprep.subr.bf16.mxu0 %v2312_v19  ;;  %2057 = vmatprep.subr.bf16.mxu1 %v2312_v19  ;;  %v1982_v23 = vld [vmem:[%s2855_s23] ss:$0 sm:$0xff]  ;;  %s2315_s16 = smov 112   ;;  %s2316_s18 = smov 96   ;;  %v2317_v29 = vmov 1983009808  }
  0xe1   : > { %2050 = vmatpush3.bf16.msra.mxu0 %v2192_v18  ;;  %2053 = vmatprep.mubr.msk.bf16.mxu0 %vm2313_vm1, %v2312_v19  ;;  %v862_v30 = vunpack.c.l.s4 %v2317_v29  ;;  %v2318_v32 = vmov 1934713408   ;;  %v865_v35 = vshrl.u32 %v864_v31, 7  ;;  %vm1117_vm3 = vcmask 130048   ;;  %s2856_s14 = sld [smem:[#allocation19_spill]]  ;;  %s2320_s6 = smov 64  }
  0xe2   : > { %2051 = vmatprep.subr.bf16.mxu0 %v2312_v19  ;;  %2059 = vmatprep.mubr.msk.bf16.mxu1 %vm2313_vm1, %v2312_v19  ;;  %v924_v33 = vunpack.c.l.s4 %v2318_v32  ;;  %vm1220_vm4 = vcmask 64512   ;;  %vm1248_vm5 = vcmask 1043456   ;;  %s2858_s24 = scalar_lea.vmem %s2795_s7, %s2484_s19  ;;  %s2862_s2 = scalar_lea.vmem %s2799_s11, %s2484_s19  ;;  %vm1674_vm6 = vcmask 523264  }
  0xe3   : > { %v863_v34 = vunpack.c.0.s8 %v862_v30  ;;  %s2865_s21 = sld [smem:[#allocation8_spill]] }
  0xe4   : > { %v925_v38 = vunpack.c.0.s8 %v924_v33 }
  0xe5   : > { %v2568_v21 = vld [vmem:[#allocation2] sm:$0xff]  ;;  %2052 = vmatpush3.bf16.msra.mxu0 %v2193_v20  ;;  %v2589_v39 = vsub.s32 %v863_v34, %v865_v35 }
  0xe6   : > { %v775_v22 = vpack.c.bf16 %v2568_v21, %v2568_v21  ;;  %2063 = vmatprep.subr.bf16.mxu0 %v2312_v19  ;;  %v2593_v45 = vsub.s32 %v925_v38, %v865_v35 }
  0xe7   : > { %s2857_s4 = scalar_lea.vmem %s2856_s14, %s2481_s26  ;;  %s2319_s26 = smov 48  }
  0xe8   : > { %2054 = vmatmul.mubr.msk.bf16.vlgmr.msra.gmra.mrb[0].mxu0 %vm799_vm2, %v775_v22 }
  0xe9   : > { %2065 = vmatprep.mubr.msk.bf16.mxu0 %vm2313_vm1, %v2312_v19  ;;  %p2019_p1 = scmp.ne.s32.totalorder %s2865_s21, 1 }
  0xea   : > { %vm1755_vm7 = vcmask (!%p2019_p1), 253952  }
 0x1bb   : > { %v837_v24 = vpop.f32.mrb[0].mxu0 }
 0x1bc   : > { %v2584_v25 = vadd.f32 %v1982_v23, %v837_v24  ;;  %v2055_v26 = vpop.f32.mrb[1].mxu0  ;;  %v1996_v24 = vld [vmem:[%s2857_s4] ss:$0 sm:$0xff] }
 0x1bd   : > { %v840_v27 = vpop.f32.mrb[2].mxu0 }
 0x1be   : > { %850 = vrot.lane.b32.xlu1 %v2584_v25, %s2314_s0  ;;  %844 = vrot.lane.b32.xlu0 %v2584_v25, %s2315_s16  ;;  %v2056_v28 = vpop.f32.mrb[3].mxu0  ;;  %s2860_s0 = sld [smem:[#allocation24_spill]] }
 0x1c2   : > { %847 = vrot.lane.b32.xlu0 %v2584_v25, %s2316_s18 }
 0x1c4   : > { %s2861_s16 = scalar_lea.vmem %s2860_s0, %s2484_s19 }
 0x230   : > { %v851_v36 = vpop.permute.xlu1 %850  ;;  %v845_v37 = vpop.permute.xlu0 %844 }
 0x231   : > { %v875_v40 = vcombine.low %v845_v37, %v851_v36  ;;  %v876_v41 = vcombine.high %v845_v37, %v851_v36 }
 0x233   : > { %v883_v46 = vrot.slane %v875_v40, %v2589_v39  ;;  %v890_v47 = vrot.slane %v876_v41, %v2589_v39 }
 0x234   : > { %v848_v42 = vpop.permute.xlu0 %847 }
 0x235   : > { %v859_v43 = vcombine.low %v2584_v25, %v848_v42  ;;  %v860_v44 = vcombine.high %v2584_v25, %v848_v42 }
 0x237   : > { %v867_v48 = vrot.slane %v859_v43, %v2589_v39  ;;  %v874_v49 = vrot.slane %v860_v44, %v2589_v39 }
 0x239   : > { %v921_v50 = vcombine.low %v867_v48, %v883_v46  ;;  %v922_v51 = vcombine.high %v867_v48, %v883_v46  ;;  %v937_v52 = vcombine.low %v874_v49, %v890_v47  ;;  %v938_v53 = vcombine.high %v874_v49, %v890_v47 }
 0x23b   : > { %v929_v54 = vrot.slane %v921_v50, %v2593_v45  ;;  %v936_v55 = vrot.slane %v922_v51, %v2593_v45  ;;  %v945_v56 = vrot.slane %v937_v52, %v2593_v45  ;;  %v952_v57 = vrot.slane %v938_v53, %v2593_v45 }
 0x23d   : > { %v1986_v58 = vcombine.low %v929_v54, %v936_v55  ;;  %v1988_v59 = vcombine.high %v929_v54, %v936_v55  ;;  %v1990_v60 = vcombine.low %v945_v56, %v952_v57  ;;  %v1992_v61 = vcombine.high %v945_v56, %v952_v57 }
 0x23f   : > { %v1001_v62 = vrot.slane %v1986_v58, %v2589_v39  ;;  %v1017_v63 = vrot.slane %v1988_v59, %v2589_v39  ;;  %v1033_v0 = vrot.slane %v1990_v60, %v2589_v39  ;;  %v1049_v1 = vrot.slane %v1992_v61, %v2589_v39 }
 0x241   : > { %v1058_v2 = vcombine.high %v1001_v62, %v1017_v63  ;;  %v1082_v3 = vcombine.high %v1033_v0, %v1049_v1  ;;  %v1057_v4 = vcombine.low %v1001_v62, %v1017_v63  ;;  %v1081_v6 = vcombine.low %v1033_v0, %v1049_v1 }
 0x243   : > { %v1072_v5 = vrot.slane %v1058_v2, %v2593_v45  ;;  %v1096_v7 = vrot.slane %v1082_v3, %v2593_v45  ;;  %v1065_v12 = vrot.slane %v1057_v4, %v2593_v45  ;;  %v1089_v13 = vrot.slane %v1081_v6, %v2593_v45 }
 0x245   : > { %v1107_v8 = vcombine.low %v1072_v5, %v1096_v7  ;;  %v1108_v9 = vcombine.high %v1072_v5, %v1096_v7  ;;  %v1105_v16 = vcombine.low %v1065_v12, %v1089_v13  ;;  %v1106_v17 = vcombine.high %v1065_v12, %v1089_v13 }
 0x247   : > { %v1113_v10 = vpack.c.bf16 %v1107_v8, %v1107_v8  ;;  %v1114_v11 = vpack.c.bf16 %v1108_v9, %v1108_v9  ;;  %v1111_v18 = vpack.c.bf16 %v1105_v16, %v1105_v16  ;;  %v1112_v20 = vpack.c.bf16 %v1106_v17, %v1106_v17 }
 0x249   : > { %v1122_v14 = vsel %vm1117_vm3, %v1113_v10, 0  ;;  %v1168_v15 = vsel %vm1117_vm3, %v1114_v11, 0 }
 0x24a   : > { %2058 = vmatpush3.bf16.xpose.msra.mxu1 %v1122_v14  ;;  %2064 = vmatpush3.bf16.xpose.msra.mxu0 %v1168_v15 }
 0x24b   : > { %2069 = vmatprep.subr.bf16.mxu1 %v2312_v19  ;;  %2075 = vmatprep.subr.bf16.mxu0 %v2312_v19 }
 0x251   : > { %2060 = vmatmul.mubr.msk.bf16.vlgmr.msra.gmra.mrb[0].mxu1 %vm1117_vm3, %v1111_v18  ;;  %2066 = vmatmul.mubr.msk.bf16.vlgmr.msra.gmra.mrb[4].mxu0 %vm1117_vm3, %v1112_v20 }
 0x252   : > { %2071 = vmatprep.mubr.msk.bf16.mxu1 %vm2313_vm1, %v2312_v19  ;;  %2077 = vmatprep.mubr.msk.bf16.mxu0 %vm2313_vm1, %v2312_v19 }
 0x324   : > { %v1158_v22 = vpop.f32.mrb[0].mxu1  ;;  %v1204_v23 = vpop.f32.mrb[4].mxu0 }
 0x325   : > { %v1210_v26 = vmul.f32 0.25, %v1158_v22  ;;  %v1211_v27 = vmul.f32 0.25, %v1204_v23  ;;  %v2061_v28 = vpop.f32.mrb[1].mxu1  ;;  %v2067_v29 = vpop.f32.mrb[5].mxu0 }
 0x326   : > { %v1161_v30 = vpop.f32.mrb[2].mxu1  ;;  %v1207_v31 = vpop.f32.mrb[6].mxu0 }
 0x327   : > { %v2062_v32 = vpop.f32.mrb[3].mxu1  ;;  %v2068_v33 = vpop.f32.mrb[7].mxu0  ;;  %v1218_v34 = vadd.f32 %v1996_v24, %v1210_v26  ;;  %v1219_v35 = vadd.f32 %v1996_v24, %v1211_v27  ;;  %v2194_v30 = vld [vmem:[%s2507_s30] sm:$0xff]  }
 0x329   : > { %v1221_v36 = vsel %vm1220_vm4, %v1218_v34, -inf  ;;  %v1224_v37 = vsel %vm1220_vm4, %v1219_v35, -inf }
 0x32a   : > { %1222 = vmax.xlane.f32.xlu1 %v1221_v36  ;;  %1225 = vmax.xlane.f32.xlu0 %v1224_v37 }
 0x3b7   : > { %v1223_v38 = vpop.xlane.xlu1 %1222  ;;  %v1226_v40 = vpop.xlane.xlu0 %1225 }
 0x3b8   : > { %v1227_v41 = vsub.f32 %v1218_v34, %v1223_v38  ;;  %v1228_v42 = vsub.f32 %v1219_v35, %v1226_v40 }
 0x3ba   : > { %v1229_v43 = vmul.f32 1.442695, %v1227_v41  ;;  %v1231_v44 = vmul.f32 1.442695, %v1228_v42 }
 0x3bc   : > { %2202 = vpow2.f32 %v1229_v43 }
 0x3bd   : > { %2204 = vpow2.f32 %v1231_v44 }
 0x3c6   : > { %v2203_v46 = vpop.eup %2202 }
 0x3c7   : > { %v2205_v47 = vpop.eup %2204  ;;  %v1233_v48 = vsel %vm1220_vm4, %v2203_v46, 0.0 }
 0x3c8   : > { %1234 = vadd.xlane.f32.xlu0 %v1233_v48  ;;  %v1236_v49 = vsel %vm1220_vm4, %v2205_v47, 0.0 }
 0x3c9   : > { %1237 = vadd.xlane.f32.xlu1 %v1236_v49 }
 0x3da   : > { %856 = vrot.lane.b32.xlu1 %v2584_v25, %s2319_s26 }
 0x3de   : > { %853 = vrot.lane.b32.xlu0 %v2584_v25, %s2320_s6 }
 0x455   : > { %v1235_v50 = vpop.xlane.xlu0 %1234 }
 0x456   : > { %v1238_v51 = vpop.xlane.xlu1 %1237  ;;  %2206 = vrcp.f32 %v1235_v50 }
 0x457   : > { %2208 = vrcp.f32 %v1238_v51 }
 0x459   : > { %v854_v52 = vpop.permute.xlu0 %853 }
 0x45a   : > { %v857_v53 = vpop.permute.xlu1 %856  ;;  %v891_v54 = vcombine.high %v854_v52, %v2312_v19  ;;  %v898_v55 = vrot.slane %v854_v52, %v2589_v39 }
 0x45b   : > { %v906_v56 = vcombine.high %v857_v53, %v2312_v19  ;;  %v913_v57 = vrot.slane %v857_v53, %v2589_v39  ;;  %v2195_v53 = vld [vmem:[%s2507_s30 + $0x8] sm:$0xff]   ;;  %s2321_s30 = smov 16  }
 0x45c   : > { %v905_v58 = vrot.slane %v891_v54, %v2589_v39 }
 0x45d   : > { %v920_v59 = vrot.slane %v906_v56, %v2589_v39  ;;  %v953_v60 = vcombine.low %v898_v55, %v913_v57  ;;  %v954_v61 = vcombine.high %v898_v55, %v913_v57 }
 0x45f   : > { %v961_v25 = vrot.slane %v953_v60, %v2593_v45  ;;  %v968_v62 = vrot.slane %v954_v61, %v2593_v45  ;;  %v969_v63 = vcombine.low %v905_v58, %v920_v59  ;;  %v970_v0 = vcombine.high %v905_v58, %v920_v59 }
 0x460   : > { %v2207_v13 = vpop.eup %2206 }
 0x461   : > { %v977_v1 = vrot.slane %v969_v63, %v2593_v45  ;;  %v984_v2 = vrot.slane %v970_v0, %v2593_v45  ;;  %v1987_v3 = vcombine.low %v961_v25, %v968_v62  ;;  %v1989_v4 = vcombine.high %v961_v25, %v968_v62  ;;  %v2209_v16 = vpop.eup %2208 }
 0x462   : > { %v1242_v20 = vmul.f32 %v2209_v16, %v2205_v47  ;;  %v1241_v22 = vmul.f32 %v2207_v13, %v2203_v46  ;;  %v2196_v16 = vld [vmem:[%s2524_s3] sm:$0xff]  }
 0x463   : > { %v1008_v5 = vrot.slane %v1987_v3, %v2589_v39  ;;  %v1991_v6 = vcombine.low %v977_v1, %v984_v2  ;;  %v1993_v7 = vcombine.high %v977_v1, %v984_v2  ;;  %v1024_v8 = vrot.slane %v1989_v4, %v2589_v39 }
 0x464   : > { %v1243_v28 = vpack.c.bf16 %v1241_v22, %v1241_v22  ;;  %v1244_v29 = vpack.c.bf16 %v1242_v20, %v1242_v20 }
 0x465   : > { %v1040_v9 = vrot.slane %v1991_v6, %v2589_v39  ;;  %v1056_v10 = vrot.slane %v1993_v7, %v2589_v39  ;;  %v1073_v11 = vcombine.low %v1008_v5, %v1024_v8 }
 0x467   : > { %v1097_v12 = vcombine.low %v1040_v9, %v1056_v10  ;;  %v1080_v14 = vrot.slane %v1073_v11, %v2593_v45 }
 0x469   : > { %v1104_v15 = vrot.slane %v1097_v12, %v2593_v45 }
 0x46b   : > { %v1109_v17 = vcombine.low %v1080_v14, %v1104_v15  ;;  %v1110_v18 = vcombine.high %v1080_v14, %v1104_v15 }
 0x46d   : > { %v1115_v23 = vpack.c.bf16 %v1109_v17, %v1109_v17  ;;  %v1116_v24 = vpack.c.bf16 %v1110_v18, %v1110_v18  ;;  %v2197_v17 = vld [vmem:[%s2524_s3 + $0x8] sm:$0xff]   ;;  %s2859_s3 = scalar_lea.vmem %s2796_s8, %s2484_s19 }
 0x46f   : > { %v1250_v26 = vsel %vm1248_vm5, %v1115_v23, 0  ;;  %v1296_v27 = vsel %vm1248_vm5, %v1116_v24, 0 }
 0x470   : > { %2070 = vmatpush3.bf16.msra.mxu1 %v1250_v26  ;;  %2076 = vmatpush3.bf16.msra.mxu0 %v1296_v27 }
 0x471   : > { %2081 = vmatprep.subr.bf16.mxu1 %v2312_v19  ;;  %2089 = vmatprep.subr.bf16.mxu0 %v2312_v19 }
 0x473   : > { %2072 = vmatmul.mubr.msk.bf16.vlgmr.msra.gmra.mrb[4].mxu1 %vm1220_vm4, %v1243_v28  ;;  %2078 = vmatmul.mubr.msk.bf16.vlgmr.msra.gmra.mrb[8].mxu0 %vm1220_vm4, %v1244_v29  ;;  %v2005_v29 = vld [vmem:[%s2859_s3] ss:$0 sm:$0xff] }
 0x474   : > { %2085 = vmatprep.mubr.msk.bf16.mxu1 %vm2313_vm1, %v2312_v19  ;;  %2093 = vmatprep.mubr.msk.bf16.mxu0 %vm2313_vm1, %v2312_v19 }
 0x475   : > { %2082 = vmatpush3.bf16.msra.mxu1 %v2194_v30  ;;  %2090 = vmatpush3.bf16.msra.mxu0 %v2196_v16 }
 0x476   : > { %2083 = vmatprep.subr.bf16.mxu1 %v2312_v19  ;;  %2091 = vmatprep.subr.bf16.mxu0 %v2312_v19 }
 0x479   : > { %2084 = vmatpush3.bf16.msra.mxu1 %v2195_v53  ;;  %2092 = vmatpush3.bf16.msra.mxu0 %v2197_v17 }
 0x47a   : > { %2097 = vmatprep.subr.bf16.mxu1 %v2312_v19 }
 0x546   : > { %v1286_v31 = vpop.f32.mrb[4].mxu1  ;;  %v1332_v32 = vpop.f32.mrb[8].mxu0 }
 0x547   : > { %v1338_v33 = vcombine.high %v1286_v31, %v2312_v19  ;;  %v1345_v34 = vrot.slane %v1286_v31, %v2589_v39  ;;  %v1353_v35 = vcombine.high %v1332_v32, %v2312_v19  ;;  %v1360_v36 = vrot.slane %v1332_v32, %v2589_v39  ;;  %v2073_v37 = vpop.f32.mrb[5].mxu1  ;;  %v2079_v38 = vpop.f32.mrb[9].mxu0  ;;  %v2006_v31 = vld [vmem:[%s2861_s16] ss:$0 sm:$0xff] }
 0x548   : > { %v1289_v40 = vpop.f32.mrb[6].mxu1  ;;  %v1335_v41 = vpop.f32.mrb[10].mxu0  ;;  %v2200_v37 = vld [vmem:[%s2538_s20 + $0x10] sm:$0xff]   ;;  %v2201_v38 = vld [vmem:[%s2538_s20 + $0x18] sm:$0xff]  }
 0x549   : > { %v1352_v42 = vrot.slane %v1338_v33, %v2589_v39  ;;  %v1367_v43 = vrot.slane %v1353_v35, %v2589_v39  ;;  %v1368_v44 = vcombine.low %v1345_v34, %v1360_v36  ;;  %v1369_v46 = vcombine.high %v1345_v34, %v1360_v36  ;;  %v2074_v47 = vpop.f32.mrb[7].mxu1  ;;  %v2080_v48 = vpop.f32.mrb[11].mxu0  ;;  %v2198_v35 = vld [vmem:[%s2538_s20] sm:$0xff]   ;;  %v2199_v36 = vld [vmem:[%s2538_s20 + $0x8] sm:$0xff]  }
 0x54a   : > { %v2007_v40 = vld [vmem:[%s2862_s2] ss:$0 sm:$0xff] }
 0x54b   : > { %v1376_v49 = vrot.slane %v1368_v44, %v2593_v45  ;;  %v1383_v50 = vrot.slane %v1369_v46, %v2593_v45  ;;  %v1384_v51 = vcombine.low %v1352_v42, %v1367_v43  ;;  %v1385_v52 = vcombine.high %v1352_v42, %v1367_v43 }
 0x54d   : > { %v1392_v54 = vrot.slane %v1384_v51, %v2593_v45  ;;  %v1399_v55 = vrot.slane %v1385_v52, %v2593_v45  ;;  %v1404_v56 = vcombine.low %v1376_v49, %v1383_v50  ;;  %v1999_v57 = vcombine.high %v1376_v49, %v1383_v50 }
 0x54f   : > { %v1411_v58 = vrot.slane %v1404_v56, %v2589_v39  ;;  %v1419_v59 = vrot.slane %v1999_v57, %v2589_v39  ;;  %v1420_v60 = vcombine.low %v1392_v54, %v1399_v55  ;;  %v2000_v61 = vcombine.high %v1392_v54, %v1399_v55  ;;  %v2011_v56 = vld [vmem:[%s727_s27] ss:$0 sm:$0xff] }
 0x551   : > { %v1427_v25 = vrot.slane %v1420_v60, %v2589_v39  ;;  %v1435_v62 = vrot.slane %v2000_v61, %v2589_v39  ;;  %v1436_v63 = vcombine.low %v1411_v58, %v1419_v59  ;;  %v2001_v39 = vld [vmem:[%s2858_s24] ss:$0 sm:$0xff] }
 0x553   : > { %v1444_v0 = vcombine.low %v1427_v25, %v1435_v62  ;;  %v1443_v1 = vrot.slane %v1436_v63, %v2593_v45 }
 0x555   : > { %v1451_v2 = vrot.slane %v1444_v0, %v2593_v45 }
 0x557   : > { %v1453_v3 = vcombine.high %v1443_v1, %v1451_v2  ;;  %v1452_v4 = vcombine.low %v1443_v1, %v1451_v2 }
 0x559   : > { %1455 = vrot.lane.b32.xlu1 %v1453_v3, %s2321_s30 }
 0x5cb   : > { %v1456_v5 = vpop.permute.xlu1 %1455 }
 0x5cc   : > { %v1458_v6 = vsel %vm1117_vm3, %v1452_v4, %v1456_v5 }
 0x5cd   : > { %v1459_v7 = vpack.c.bf16 %v1458_v6, %v1458_v6 }
 0x5cf   : > { %2086 = vmatmul.mubr.msk.bf16.vlgmr.msra.gmra.mrb[8].mxu1 %vm799_vm2, %v1459_v7 }
 0x5d0   : > { %2105 = vmatprep.mubr.msk.bf16.mxu1 %vm2313_vm1, %v2312_v19  ;;  %2098 = vmatpush3.bf16.msra.mxu1 %v2198_v35 }
 0x5d1   : > { %2099 = vmatprep.subr.bf16.mxu1 %v2312_v19 }
 0x5d4   : > { %2100 = vmatpush3.bf16.msra.mxu1 %v2199_v36 }
 0x5d5   : > { %2101 = vmatprep.subr.bf16.mxu1 %v2312_v19 }
 0x5d8   : > { %2102 = vmatpush3.bf16.msra.mxu1 %v2200_v37 }
 0x5d9   : > { %2103 = vmatprep.subr.bf16.mxu1 %v2312_v19 }
 0x5dc   : > { %2104 = vmatpush3.bf16.msra.mxu1 %v2201_v38 }
 0x6a2   : > { %v1520_v45 = vpop.f32.mrb[8].mxu1 }
 0x6a3   : > { %v1521_v8 = vadd.f32 %v2001_v39, %v1520_v45  ;;  %v2087_v9 = vpop.f32.mrb[9].mxu1 }
 0x6a4   : > { %v1523_v10 = vpop.f32.mrb[10].mxu1 }
 0x6a5   : > { %v1526_v11 = vadd.f32 %v1521_v8, %v2568_v21  ;;  %v2088_v12 = vpop.f32.mrb[11].mxu1  ;;  %v2017_v8 = vld [vmem:[%s730_s1] ss:$0 sm:$0xff] }
 0x6a6   : > { %v2018_v10 = vld [vmem:[%s733_s9] ss:$0 sm:$0xff] }
 0x6a7   : > { %v1529_v13 = vsel %vm799_vm2, %v1526_v11, 0.0  ;;  %v1533_v14 = vmul.f32 %v1526_v11, %v1526_v11 }
 0x6a8   : > { %1530 = vadd.xlane.f32.xlu0 %v1529_v13 }
 0x6a9   : > { %v1534_v15 = vsel %vm799_vm2, %v1533_v14, 0.0 }
 0x6aa   : > { %1535 = vadd.xlane.f32.xlu1 %v1534_v15 }
 0x735   : > { %v1531_v18 = vpop.xlane.xlu0 %1530 }
 0x736   : > { %v1532_v20 = vmul.f32 0.03125, %v1531_v18 }
 0x737   : > { %v1536_v21 = vpop.xlane.xlu1 %1535 }
 0x738   : > { %v1538_v22 = vmul.f32 %v1532_v20, %v1532_v20  ;;  %v1537_v23 = vmul.f32 0.03125, %v1536_v21  ;;  %v1540_v27 = vsub.f32 %v1526_v11, %v1532_v20 }
 0x73a   : > { %v1539_v24 = vsub.f32 %v1537_v23, %v1538_v22 }
 0x73c   : > { %v1541_v26 = vadd.f32 1e-12, %v1539_v24 }
 0x73e   : > { %2210 = vrsqrt.f32 %v1541_v26 }
 0x748   : > { %v2211_v28 = vpop.eup %2210 }
 0x749   : > { %v1543_v30 = vmul.f32 %v2211_v28, %v1540_v27 }
 0x74b   : > { %v1550_v32 = vmul.f32 %v2005_v29, %v1543_v30 }
 0x74d   : > { %v1557_v33 = vadd.f32 %v2006_v31, %v1550_v32 }
 0x74f   : > { %v1558_v34 = vpack.c.bf16 %v1557_v33, %v1557_v33 }
 0x751   : > { %2094 = vmatmul.mubr.msk.bf16.vlgmr.msra.gmra.mrb[12].mxu0 %vm799_vm2, %v1558_v34 }
 0x824   : > { %v1619_v41 = vpop.f32.mrb[12].mxu0 }
 0x825   : > { %v1620_v42 = vadd.f32 %v2007_v40, %v1619_v41  ;;  %v2095_v43 = vpop.f32.mrb[13].mxu0 }
 0x826   : > { %v1622_v44 = vpop.f32.mrb[14].mxu0 }
 0x827   : > { %v1625_v46 = vmul.f32 %v1620_v42, %v1620_v42  ;;  %v2096_v47 = vpop.f32.mrb[15].mxu0 }
 0x829   : > { %v1626_v48 = vmul.f32 %v1625_v46, %v1620_v42 }
 0x82b   : > { %v1627_v49 = vmul.f32 0.044715, %v1626_v48 }
 0x82d   : > { %v1628_v50 = vadd.f32 %v1627_v49, %v1620_v42 }
 0x82f   : > { %v1629_v51 = vmul.f32 0.7978846, %v1628_v50 }
 0x831   : > { %2212 = vtanh.f32 %v1629_v51 }
 0x83b   : > { %v2213_v19 = vpop.eup %2212 }
 0x83c   : > { %v1631_v52 = vadd.f32 1.0, %v2213_v19 }
 0x83e   : > { %v1632_v53 = vmul.f32 0.5, %v1631_v52 }
 0x840   : > { %v1633_v54 = vmul.f32 %v1632_v53, %v1620_v42 }
 0x842   : > { %v1634_v55 = vpack.c.bf16 %v1633_v54, %v1633_v54 }
 0x844   : > { %2106 = vmatmul.mubr.msk.bf16.vlgmr.msra.gmra.mrb[12].mxu1 %vm1674_vm6, %v1634_v55 }
 0x917   : > { %v1712_v57 = vpop.f32.mrb[12].mxu1 }
 0x918   : > { %v1713_v58 = vadd.f32 %v2011_v56, %v1712_v57  ;;  %v2107_v59 = vpop.f32.mrb[13].mxu1 }
 0x919   : > { %v1715_v60 = vpop.f32.mrb[14].mxu1 }
 0x91a   : > { %v1718_v61 = vadd.f32 %v1713_v58, %v1557_v33  ;;  %v2108_v25 = vpop.f32.mrb[15].mxu1 }
 0x91c   : > { %v1721_v62 = vsel %vm799_vm2, %v1718_v61, 0.0  ;;  %v1725_v63 = vmul.f32 %v1718_v61, %v1718_v61 }
 0x91d   : > { %1722 = vadd.xlane.f32.xlu0 %v1721_v62 }
 0x91e   : > { %v1726_v0 = vsel %vm799_vm2, %v1725_v63, 0.0 }
 0x921   : > { %1727 = vadd.xlane.f32.xlu0 %v1726_v0 }
 0x9aa   : > { %v1723_v1 = vpop.xlane.xlu0 %1722 }
 0x9ab   : > { %v1724_v2 = vmul.f32 0.03125, %v1723_v1 }
 0x9ad   : > { %v1730_v4 = vmul.f32 %v1724_v2, %v1724_v2  ;;  %v1732_v39 = vsub.f32 %v1718_v61, %v1724_v2 }
 0x9ae   : > { %v1728_v3 = vpop.xlane.xlu0 %1727 }
 0x9af   : > { %v1729_v5 = vmul.f32 0.03125, %v1728_v3 }
 0x9b1   : > { %v1731_v6 = vsub.f32 %v1729_v5, %v1730_v4 }
 0x9b3   : > { %v1733_v7 = vadd.f32 1e-12, %v1731_v6 }
 0x9b5   : > { %2214 = vrsqrt.f32 %v1733_v7 }
 0x9bf   : > { %v2215_v45 = vpop.eup %2214 }
 0x9c0   : > { %v1735_v9 = vmul.f32 %v2215_v45, %v1732_v39  ;;  %1754 = sbr.rel (%p2019_p1) target bundleno = 2504 (0x9c8), region = 92 }
 0x9c2   : > { %v1742_v11 = vmul.f32 %v2017_v8, %v1735_v9 }
 0x9c4   : > { %v1749_v12 = vadd.f32 %v2018_v10, %v1742_v11 }
 0x9c6   : > { %1750 = vst.msk [vmem:[#allocation2] sm:$0xff] %vm799_vm2, %v1749_v12 }
 0x9c7   : > { %1756 = vst.msk [vmem:[%s2550_s15] sm:$0x1] %vm1755_vm7, %v1749_v12 }
 0x9c8 PF: > { %s2866_s24 = sld [smem:[#allocation9_spill]]  ;;  %s2868_s19 = sld [smem:[#allocation28_spill]] }
 0x9c9   : > { %s1770_s29 = sshll.u32 %s2550_s15, 4  ;;  %s2869_s23 = sand.u32 1, %s2286_s22   ;;  %s1771_s29 = int_to_ptr.vmem [resolvable:$true] %s1770_s29 }
 0x9ca   : > { %s1758_s0 = scalar_lea.sflag [#allocation4], %s2869_s23  ;;  %s2216_s16 = scalar_lea.vmem %s1771_s29, 16 }
 0x9cb   : > { %p2217_p2 = scmp.ne.s32.totalorder %s1771_s29, %s2216_s16  ;;  %s2322_s18 = smov [#allocation3]  }
 0x9cc   : > { %s2220_s28 = sshll.u32 %s2322_s18, 4  ;;  %s2221_s28 = int_to_ptr.vmem [resolvable:$false] %s2220_s28 }
 0x9cd   : > { %p2218_p4 = pnand %p2217_p2, %p2457_p3  ;;  %s2222_s2 = scalar_lea.vmem %s2221_s28, 32 }
 0x9ce   : > { %s2020_s17 = sshll.u32 %s2866_s24, 4  ;;  %p2223_p6 = scmp.lt.s32.totalorder %s1771_s29, %s2221_s28 }
 0x9cf   : > { %s2738_s9 = scalar_lea.hbm %s2868_s19, %s2020_s17  ;;  %p2219_p5 = pneg %p2218_p4 }
 0x9d0   : > { %p2224_p7 = scmp.lt.s32.totalorder %s2222_s2, %s2216_s16 }
 0x9d2   : > { %p2225_p8 = por %p2224_p7, %p2223_p6 }
 0x9d4   : > { %p2226_p10 = pnand %p2225_p8, %p2219_p5 }
 0x9d6   : > { %2229 = shalt.err (!%p2226_p10)
}
 0x9d7   : > { %s2230_s15 = scalar_lea.hbm %s2738_s9, 16  ;;  %s2234_s27 = scalar_lea.hbm %s2868_s19, 32 }
 0x9d8   : > { %p2231_p11 = scmp.ne.s32.totalorder %s2738_s9, %s2230_s15  ;;  %p2235_p0 = scmp.lt.u32.totalorder %s2738_s9, %s2868_s19 }
 0x9d9   : > { %p2236_p1 = scmp.lt.u32.totalorder %s2234_s27, %s2230_s15  ;;  %p2238_p4 = scmp.lt.u32.totalorder %s2230_s15, %s2738_s9 }
 0x9da   : > { %p2232_p12 = pnand %p2231_p11, %p2457_p3 }
 0x9db   : > { %p2237_p2 = por %p2236_p1, %p2235_p0 }
 0x9dc   : > { %p2233_p13 = pneg %p2232_p12 }
 0x9dd   : > { %p2239_p5 = por %p2238_p4, %p2237_p2 }
 0x9df   : > { %p2240_p6 = pnand %p2239_p5, %p2233_p13 }
 0x9e1   : > { %2243 = shalt.err (!%p2240_p6)
}
 0x9e2   : > { %2109 = dma.vmem_to_hbm [thread:$0]  (%p2457_p3), %s1771_s29, 16, %s2738_s9, %s1758_s0  }
 0x9e3 PF: > { %s2870_s6 = sld [smem:[#allocation12_spill]]  ;;  %s2871_s30 = sld [smem:[#allocation6_spill]] }
 0x9e9   : > { %p2115_p7 = scmp.ge.s32.totalorder %s2870_s6, 2  ;;  %s1782_s21 = sand.u32 1, %s2871_s30  }
 0x9ea   : > { %s1783_s24 = scalar_lea.sflag [#allocation4], %s1782_s21 }
 0x9eb   : > { %p2112_p8 = pnand %p2115_p7, %p2467_p9 }
 0x9ed   : > { %2277 = dma.done.wait (!%p2112_p8), %s1783_s24, 16  }
 0x9ee   : > { %2279 = vsyncadd (!%p2112_p8), %s1783_s24, 4294967280  ;;  %s29_s28 = sadd.s32 1, %s2870_s6   ;;  %s2873_s17 = sld [smem:[#allocation7_spill]] }
 0x9ef   : > { %p26_p10 = scmp.ge.s32.totalorder %s29_s28, 6   ;;  %s2874_s23 = sld [smem:[#allocation17_spill]] }
 0x9f0   : > { %s2875_s24 = sld [smem:[#allocation10_spill]]  ;;  %s2876_s25 = sld [smem:[#allocation11_spill]] }
 0x9f1   : > { %s2877_s26 = sld [smem:[#allocation13_spill]]  ;;  %s2878_s27 = sld [smem:[#allocation15_spill]] }
 0x9f2   : > { %s2879_s21 = smov %s2286_s22  ;;  %28 = sbr.rel (!%p26_p10) target bundleno = 17 (0x11), region = 166 }
 0x9f4   : > { %s2880_s22 = smov %s2873_s17 }
 0x9f9   :  { %1787 = vsyncpa [#allocation4], 1 }
 0x9fa   :  { %1789 = vsyncpa [#allocation4 + $0x1], 1 }

</bundles_post_ra>
